<compile_context>
chip_gen: v5e
topology: v5e:2x2
jax: 0.10.0
libtpu: 0.0.40
codegen_flags: <defaults>
</compile_context>

<pallas_src>
import functools

import numpy as np

import jax
import jax.numpy as jnp
from jax import lax
from jax.experimental import pallas as pl
from jax.experimental.pallas import tpu as pltpu


# ---------------------------------------------------------------------------
# shared per-chunk math
# ---------------------------------------------------------------------------
def _chunk_loss(x, t, w, *, num_classes, ignore_index, ignore_background,
                train_id_0, lch):
    """Per-pixel NLL for one (C, lch) chunk. Returns (nll, valid, w_per)."""
    t = t - train_id_0
    bg = 255 - train_id_0
    repl = ignore_index if ignore_background else (num_classes - 1)
    t = jnp.where(t == bg, repl, t)

    # log-softmax over the class (sublane) axis
    m = jnp.max(x, axis=0, keepdims=True)                              # (1,lch)
    lse = m + jnp.log(jnp.sum(jnp.exp(x - m), axis=0, keepdims=True))

    # gather target logit via one-hot over classes
    cls = lax.broadcasted_iota(jnp.int32, (num_classes, lch), 0)       # (C,lch)
    onehot = cls == t
    picked = jnp.sum(jnp.where(onehot, x, 0.0), axis=0, keepdims=True)

    nll = lse - picked                                                 # -log p
    valid = t != ignore_index
    w_per = None
    if w is not None:
        w_per = jnp.sum(jnp.where(onehot, w, 0.0), axis=0, keepdims=True)
    return nll, valid, w_per


# ---------------------------------------------------------------------------
# kernels
# ---------------------------------------------------------------------------
def _ce_reduce_kernel(*refs, num_classes, ignore_index, ignore_background,
                      train_id_0, has_weight, need_denom, hw, tp, lch,
                      tiles_per_core, total_tiles):
    """Accumulating kernel for reduction in ('mean', 'sum')."""
    it = iter(refs)
    _n_tbl_ref = next(it)            # consumed by the index_map only
    j_tbl_ref = next(it)             # tile-within-image lookup (SMEM)
    w_ref = next(it) if has_weight else None
    logits_ref = next(it)
    tgt_ref = next(it)
    lsum_ref = next(it)
    dsum_ref = next(it) if need_denom else None
    acc_l = next(it)
    acc_d = next(it) if need_denom else None
    del _n_tbl_ref

    p = pl.program_id(0)
    i = pl.program_id(1)

    @pl.when(i == 0)
    def _():
        acc_l[...] = jnp.zeros_like(acc_l)
        if need_denom:
            acc_d[...] = jnp.zeros_like(acc_d)

    t_idx = p * tiles_per_core + i          # flattened (batch, tile) index
    base = j_tbl_ref[t_idx] * tp            # first pixel of this tile
    tile_live = t_idx < total_tiles         # duplicated tail tiles contribute 0

    w = w_ref[...].astype(jnp.float32) if has_weight else None
    n_chunks = tp // lch
    zeros = jnp.zeros((1, lch), jnp.float32)

    def body(c, carry):
        if need_denom:
            al, ad = carry
        else:
            al, ad = carry, None
        start = pl.multiple_of(c * lch, lch)
        x = logits_ref[0, :, pl.ds(start, lch)].astype(jnp.float32)    # (C,lch)
        t = tgt_ref[0, :, pl.ds(start, lch)].astype(jnp.int32)         # (1,lch)
        nll, valid, w_per = _chunk_loss(
            x, t, w, num_classes=num_classes, ignore_index=ignore_index,
            ignore_background=ignore_background, train_id_0=train_id_0,
            lch=lch)
        pix = base + start + lax.broadcasted_iota(jnp.int32, (1, lch), 1)
        in_range = (pix < hw) & tile_live
        valid = valid & in_range
        if has_weight:
            al = al + jnp.where(valid, w_per * nll, 0.0)
            if need_denom:
                ad = ad + jnp.where(in_range, w_per, 0.0)
        else:
            al = al + jnp.where(valid, nll, 0.0)
            if need_denom:
                ad = ad + valid.astype(jnp.float32)
        return (al, ad) if need_denom else al

    init = (zeros, zeros) if need_denom else zeros
    res = lax.fori_loop(0, n_chunks, body, init, unroll=n_chunks <= 4)
    if need_denom:
        al, ad = res
        acc_l[...] += al
        acc_d[...] += ad
    else:
        acc_l[...] += res

    @pl.when(i == pl.num_programs(1) - 1)
    def _():
        lsum_ref[...] = jnp.sum(acc_l[...]).reshape(1, 1, 1)
        if need_denom:
            dsum_ref[...] = jnp.sum(acc_d[...]).reshape(1, 1, 1)


def _ce_none_kernel(*refs, num_classes, ignore_index, ignore_background,
                    train_id_0, has_weight, tp, lch):
    """Per-pixel kernel for reduction='none' (lane-dense output)."""
    if has_weight:
        w_ref, logits_ref, tgt_ref, loss_ref = refs
    else:
        logits_ref, tgt_ref, loss_ref = refs
        w_ref = None

    w = w_ref[...].astype(jnp.float32) if has_weight else None
    n_chunks = tp // lch

    def body(c, carry):
        start = pl.multiple_of(c * lch, lch)
        x = logits_ref[0, :, pl.ds(start, lch)].astype(jnp.float32)
        t = tgt_ref[0, :, pl.ds(start, lch)].astype(jnp.int32)
        nll, valid, w_per = _chunk_loss(
            x, t, w, num_classes=num_classes, ignore_index=ignore_index,
            ignore_background=ignore_background, train_id_0=train_id_0,
            lch=lch)
        per_pix = jnp.where(valid, (w_per * nll) if has_weight else nll, 0.0)
        loss_ref[0, :, pl.ds(start, lch)] = per_pix
        return carry

    lax.fori_loop(0, n_chunks, body, 0, unroll=n_chunks <= 4)


# ---------------------------------------------------------------------------
# wrapper
# ---------------------------------------------------------------------------
def _pick_tile(hw, num_classes, itemsize):
    """Largest lane tile (multiple of 128) with one logits tile <= ~6 MiB."""
    hw128 = ((hw + 127) // 128) * 128
    budget = 6 * 1024 * 1024
    cap = max(128, budget // max(1, num_classes * itemsize))
    tp = min(32768, cap, hw128)
    if tp >= 512:
        tp = (tp // 512) * 512
        lch = 512
    else:
        tp = max(128, (tp // 128) * 128)
        lch = 128
    return tp, lch


def cross_entropy_loss(outputs, targets, *, weight=None, ignore_index=-100,
                       ignore_background=False, train_id_0=0,
                       reduction='mean'):
    assert reduction in ('mean', 'sum', 'none')
    N, C = outputs.shape[0], outputs.shape[1]
    spatial = outputs.shape[2:]
    assert targets.shape == (N,) + tuple(spatial)
    HW = 1
    for s in spatial:
        HW *= s

    # Free reshapes only: no transpose, no pad, no target dtype cast in HBM.
    logits = outputs.reshape(N, C, HW)
    tgt = targets.reshape(N, 1, HW)          # native dtype; cast in kernel

    itemsize = jnp.dtype(outputs.dtype).itemsize
    TP, LCH = _pick_tile(HW, C, itemsize)
    J = -(-HW // TP)                         # tiles per image (tail is masked)

    has_weight = weight is not None
    w_arr = (None if weight is None
             else jnp.asarray(weight, jnp.float32).reshape(C, 1))

    vmem_limit = 32 * 1024 * 1024            # safe on v5e/v6e/v7x with ~6MiB tiles

    if reduction in ('mean', 'sum'):
        need_denom = (reduction == 'mean') and (has_weight or ignore_background)
        total = N * J
        ncores = 2 if total >= 2 else 1      # keep both v7x TCs busy
        Tc = -(-total // ncores)

        # (batch, tile) lookup tables for the flattened grid; the padded tail
        # repeats the last real tile (its contribution is masked in-kernel).
        t_lin = np.minimum(np.arange(ncores * Tc), total - 1)
        n_tbl = jnp.asarray(t_lin // J, dtype=jnp.int32)
        j_tbl = jnp.asarray(t_lin % J, dtype=jnp.int32)

        def data_map(p, i, n_t, j_t):
            t = p * Tc + i
            return (n_t[t], 0, j_t[t])

        in_specs = []
        args = []
        if has_weight:
            in_specs.append(pl.BlockSpec((C, 1), lambda p, i, n_t, j_t: (0, 0)))
            args.append(w_arr)
        in_specs += [pl.BlockSpec((1, C, TP), data_map),
                     pl.BlockSpec((1, 1, TP), data_map)]
        args += [logits, tgt]

        out_map = lambda p, i, n_t, j_t: (p, 0, 0)
        part_shape = jax.ShapeDtypeStruct((ncores, 1, 1), jnp.float32)
        if need_denom:
            out_shape = (part_shape, part_shape)
            out_specs = (pl.BlockSpec((1, 1, 1), out_map),
                         pl.BlockSpec((1, 1, 1), out_map))
            scratch = [pltpu.VMEM((1, LCH), jnp.float32),
                       pltpu.VMEM((1, LCH), jnp.float32)]
        else:
            out_shape = part_shape
            out_specs = pl.BlockSpec((1, 1, 1), out_map)
            scratch = [pltpu.VMEM((1, LCH), jnp.float32)]

        kernel = functools.partial(
            _ce_reduce_kernel, num_classes=C, ignore_index=ignore_index,
            ignore_background=ignore_background, train_id_0=train_id_0,
            has_weight=has_weight, need_denom=need_denom, hw=HW, tp=TP,
            lch=LCH, tiles_per_core=Tc, total_tiles=total)

        res = pl.pallas_call(
            kernel,
            out_shape=out_shape,
            grid_spec=pltpu.PrefetchScalarGridSpec(
                num_scalar_prefetch=2,
                grid=(ncores, Tc),
                in_specs=in_specs,
                out_specs=out_specs,
                scratch_shapes=scratch),
            compiler_params=pltpu.CompilerParams(
                dimension_semantics=("parallel", "arbitrary"),
                vmem_limit_bytes=vmem_limit),
        )(n_tbl, j_tbl, *args)

        if need_denom:
            lsum, dsum = res
        else:
            lsum = res
        loss_sum = jnp.sum(lsum)
        if reduction == 'sum':
            return loss_sum
        if need_denom:
            return loss_sum / jnp.sum(dsum)
        return loss_sum / jnp.float32(N * HW)   # denom is numel (module semantics)

    # ---- reduction == 'none': per-pixel loss, lane-dense output ----
    kernel = functools.partial(
        _ce_none_kernel, num_classes=C, ignore_index=ignore_index,
        ignore_background=ignore_background, train_id_0=train_id_0,
        has_weight=has_weight, tp=TP, lch=LCH)

    in_specs = []
    args = []
    if has_weight:
        in_specs.append(pl.BlockSpec((C, 1), lambda n, j: (0, 0)))
        args.append(w_arr)
    in_specs += [pl.BlockSpec((1, C, TP), lambda n, j: (n, 0, j)),
                 pl.BlockSpec((1, 1, TP), lambda n, j: (n, 0, j))]
    args += [logits, tgt]

    loss = pl.pallas_call(
        kernel,
        out_shape=jax.ShapeDtypeStruct((N, 1, HW), jnp.float32),
        grid_spec=pltpu.PrefetchScalarGridSpec(
            num_scalar_prefetch=0,
            grid=(N, J),
            in_specs=in_specs,
            out_specs=pl.BlockSpec((1, 1, TP), lambda n, j: (n, 0, j))),
        compiler_params=pltpu.CompilerParams(
            dimension_semantics=("parallel", "parallel"),
            vmem_limit_bytes=vmem_limit),
    )(*args)
    return loss[:, 0, :].reshape((N,) + tuple(spatial))


# ---------------------------------------------------------------------------
# pure-JAX reference mirroring the PyTorch forward (for validation)
# ---------------------------------------------------------------------------
def _reference(outputs, targets, *, weight=None, ignore_index=-100,
               ignore_background=False, train_id_0=0, reduction='mean'):
    C = outputs.shape[1]
    logp = jax.nn.log_softmax(outputs.astype(jnp.float32), axis=1)
    logp = jnp.moveaxis(logp, 1, -1)
    t = targets.astype(jnp.int32) - train_id_0
    bg = 255 - train_id_0
    t = jnp.where(t == bg, ignore_index if ignore_background else C - 1, t)
    valid = t != ignore_index
    tc = jnp.clip(t, 0, C - 1)
    picked = jnp.take_along_axis(logp, tc[..., None], axis=-1)[..., 0]
    w = (jnp.ones((C,), jnp.float32) if weight is None
         else jnp.asarray(weight, jnp.float32))
    wt = w[tc]
    loss = jnp.where(valid, -picked * wt, 0.0)
    if reduction == 'none':
        return loss
    if reduction == 'sum':
        return jnp.sum(loss)
    if weight is not None:
        denom = jnp.sum(jnp.where(valid, wt, 0.0))
    elif ignore_background:
        denom = jnp.sum(valid).astype(jnp.float32)
    else:
        denom = jnp.float32(t.size)
    return jnp.sum(loss) / denom


if __name__ == "__main__":
    key = jax.random.PRNGKey(0)
    k1, k2, k3, k4, k5, k6 = jax.random.split(key, 6)

    N, C, H, W = 2, 4, 16, 16
    outputs = jax.random.normal(k1, (N, C, H, W), dtype=jnp.float32)
    targets = jax.random.randint(k2, (N, H, W), 0, C, dtype=jnp.int32)
    # sprinkle some background (255) pixels to exercise the remapping path
    bg_mask = jax.random.uniform(k3, (N, H, W)) < 0.1
    targets = jnp.where(bg_mask, 255, targets)
    wvec = jnp.array([0.5, 1.0, 2.0, 1.5], jnp.float32)

    checks = []
    # 1) default config: weight=None, ignore_background=False, mean
    checks.append((cross_entropy_loss(outputs, targets),
                   _reference(outputs, targets)))
    # 2) ignore_background=True, mean
    checks.append((cross_entropy_loss(outputs, targets, ignore_background=True),
                   _reference(outputs, targets, ignore_background=True)))
    # 3) class weights, mean
    checks.append((cross_entropy_loss(outputs, targets, weight=wvec),
                   _reference(outputs, targets, weight=wvec)))
    # 4) reduction='none'
    checks.append((cross_entropy_loss(outputs, targets, reduction='none'),
                   _reference(outputs, targets, reduction='none')))

    # 5-7) spatial size that is NOT a multiple of the lane tile (masked tail)
    H2, W2 = 10, 12
    out2 = jax.random.normal(k4, (N, C, H2, W2), dtype=jnp.float32)
    tg2 = jax.random.randint(k5, (N, H2, W2), 0, C, dtype=jnp.int32)
    tg2 = jnp.where(jax.random.uniform(k6, (N, H2, W2)) < 0.1, 255, tg2)
    checks.append((cross_entropy_loss(out2, tg2, reduction='sum'),
                   _reference(out2, tg2, reduction='sum')))
    checks.append((cross_entropy_loss(out2, tg2, weight=wvec,
                                      ignore_background=True),
                   _reference(out2, tg2, weight=wvec, ignore_background=True)))
    checks.append((cross_entropy_loss(out2, tg2, reduction='none'),
                   _reference(out2, tg2, reduction='none')))

    for idx, (got, ref) in enumerate(checks, 1):
        got = jax.block_until_ready(got)
        assert jnp.allclose(got, ref, rtol=1e-5, atol=1e-5), (idx, got, ref)

    print("KERNEL_OK")
</pallas_src>

<mosaic_0001>
module attributes {stable_mosaic.version = 11 : i64} {
  func.func @_ce_reduce_kernel(%arg0: i32, %arg1: i32, %arg2: memref<2xi32, #tpu.memory_space<smem>>, %arg3: memref<2xi32, #tpu.memory_space<smem>>, %arg4: memref<1x4x256xf32, #tpu.memory_space<vmem>>, %arg5: memref<1x1x256xi32, #tpu.memory_space<vmem>>, %arg6: memref<1x1x1xf32, #tpu.memory_space<vmem>>, %arg7: memref<1x128xf32, #tpu.memory_space<vmem>>) attributes {dimension_semantics = [#tpu.dimension_semantics<parallel>, #tpu.dimension_semantics<arbitrary>], iteration_bounds = array<i64: 2, 1>, scalar_prefetch = 2 : i64, scratch_operands = 1 : i64, tpu.core_type = #tpu.core_type<tc>, window_params = [{transform_indices = @transform_0, window_bounds = array<i64: 1, 4, 256>}, {transform_indices = @transform_1, window_bounds = array<i64: 1, 1, 256>}, {transform_indices = @transform_2, window_bounds = array<i64: 1, 1, 1>}]} {
    %c0_i32 = arith.constant 0 : i32
    %0 = arith.cmpi eq, %arg1, %c0_i32 : i32
    %1 = arith.extui %0 : i1 to i32
    %c0_i32_0 = arith.constant 0 : i32
    %2 = arith.cmpi ne, %1, %c0_i32_0 : i32
    scf.if %2 {
      %cst_35 = arith.constant 0.000000e+00 : f32
      %106 = vector.broadcast %cst_35 : f32 to vector<1x128xf32>
      %c0_36 = arith.constant 0 : index
      %c0_37 = arith.constant 0 : index
      %107 = vector.load %arg7[%c0_36, %c0_37] : memref<1x128xf32, #tpu.memory_space<vmem>>, vector<1x128xf32>
      tpu.vector_store %arg7[%c0_36, %c0_37], %106 {strides = array<i32>} : memref<1x128xf32, #tpu.memory_space<vmem>>, vector<1x128xf32>,
    } else {
    }
    %c1_i32 = arith.constant 1 : i32
    %3 = arith.muli %arg0, %c1_i32 : i32
    %4 = arith.addi %3, %arg1 : i32
    %5 = arith.index_cast %4 : i32 to index
    %6 = memref.load %arg3[%5] : memref<2xi32, #tpu.memory_space<smem>>
    %c256_i32 = arith.constant 256 : i32
    %7 = arith.muli %6, %c256_i32 : i32
    %c2_i32 = arith.constant 2 : i32
    %8 = arith.cmpi slt, %4, %c2_i32 : i32
    %cst = arith.constant 0.000000e+00 : f32
    %9 = vector.broadcast %cst : f32 to vector<1x128xf32>
    %c0_i32_1 = arith.constant 0 : i32
    %c128_i32 = arith.constant 128 : i32
    %10 = arith.muli %c0_i32_1, %c128_i32 : i32
    %11 = tpu.assume_multiple %10, 128 : i32
    %c0 = arith.constant 0 : index
    %c0_2 = arith.constant 0 : index
    %12 = arith.index_cast %11 : i32 to index
    %13 = vector.load %arg4[%c0, %c0_2, %12] : memref<1x4x256xf32, #tpu.memory_space<vmem>>, vector<1x4x128xf32>
    %14 = vector.shape_cast %13 : vector<1x4x128xf32> to vector<4x128xf32>
    %c0_3 = arith.constant 0 : index
    %c0_4 = arith.constant 0 : index
    %15 = arith.index_cast %11 : i32 to index
    %16 = vector.load %arg5[%c0_3, %c0_4, %15] : memref<1x1x256xi32, #tpu.memory_space<vmem>>, vector<1x1x128xi32>
    %17 = vector.shape_cast %16 : vector<1x1x128xi32> to vector<1x128xi32>
    %c0_i32_5 = arith.constant 0 : i32
    %18 = vector.broadcast %c0_i32_5 : i32 to vector<1x128xi32>
    %19 = arith.subi %17, %18 : vector<1x128xi32>
    %c255_i32 = arith.constant 255 : i32
    %20 = vector.broadcast %c255_i32 : i32 to vector<1x128xi32>
    %21 = arith.cmpi eq, %19, %20 : vector<1x128xi32>
    %c3_i32 = arith.constant 3 : i32
    %22 = vector.broadcast %c3_i32 : i32 to vector<1x128xi32>
    %23 = arith.select %21, %22, %19 : vector<1x128xi1>, vector<1x128xi32>
    %cst_6 = arith.constant dense<0xFF800000> : vector<128xf32>
    %24 = vector.multi_reduction <maximumf>, %14, %cst_6 [0] : vector<4x128xf32> to vector<128xf32>
    %25 = vector.shape_cast %24 : vector<128xf32> to vector<1x128xf32>
    %26 = vector.broadcast %25 : vector<1x128xf32> to vector<4x128xf32>
    %27 = arith.subf %14, %26 : vector<4x128xf32>
    %28 = math.exp %27 : vector<4x128xf32>
    %cst_7 = arith.constant dense<0.000000e+00> : vector<128xf32>
    %29 = vector.multi_reduction <add>, %28, %cst_7 [0] : vector<4x128xf32> to vector<128xf32>
    %30 = vector.shape_cast %29 : vector<128xf32> to vector<1x128xf32>
    %31 = math.log %30 : vector<1x128xf32>
    %32 = arith.addf %25, %31 : vector<1x128xf32>
    %33 = tpu.iota {dimensions = array<i32: 0>} : vector<4x128xi32>
    %34 = vector.broadcast %23 : vector<1x128xi32> to vector<4x128xi32>
    %35 = arith.cmpi eq, %33, %34 : vector<4x128xi32>
    %cst_8 = arith.constant 0.000000e+00 : f32
    %36 = vector.broadcast %cst_8 : f32 to vector<4x128xf32>
    %37 = arith.select %35, %14, %36 : vector<4x128xi1>, vector<4x128xf32>
    %cst_9 = arith.constant dense<0.000000e+00> : vector<128xf32>
    %38 = vector.multi_reduction <add>, %37, %cst_9 [0] : vector<4x128xf32> to vector<128xf32>
    %39 = vector.shape_cast %38 : vector<128xf32> to vector<1x128xf32>
    %40 = arith.subf %32, %39 : vector<1x128xf32>
    %c-100_i32 = arith.constant -100 : i32
    %41 = vector.broadcast %c-100_i32 : i32 to vector<1x128xi32>
    %42 = arith.cmpi ne, %23, %41 : vector<1x128xi32>
    %43 = arith.addi %7, %11 : i32
    %44 = tpu.iota {dimensions = array<i32: 1>} : vector<1x128xi32>
    %45 = vector.broadcast %43 : i32 to vector<1x128xi32>
    %46 = arith.addi %45, %44 : vector<1x128xi32>
    %c256_i32_10 = arith.constant 256 : i32
    %47 = vector.broadcast %c256_i32_10 : i32 to vector<1x128xi32>
    %48 = arith.cmpi slt, %46, %47 : vector<1x128xi32>
    %49 = vector.broadcast %8 : i1 to vector<1x128xi1>
    %50 = arith.andi %48, %49 : vector<1x128xi1>
    %51 = arith.andi %42, %50 : vector<1x128xi1>
    %cst_11 = arith.constant 0.000000e+00 : f32
    %52 = vector.broadcast %cst_11 : f32 to vector<1x128xf32>
    %53 = arith.select %51, %40, %52 : vector<1x128xi1>, vector<1x128xf32>
    %54 = arith.addf %9, %53 : vector<1x128xf32>
    %c1_i32_12 = arith.constant 1 : i32
    %c128_i32_13 = arith.constant 128 : i32
    %55 = arith.muli %c1_i32_12, %c128_i32_13 : i32
    %56 = tpu.assume_multiple %55, 128 : i32
    %c0_14 = arith.constant 0 : index
    %c0_15 = arith.constant 0 : index
    %57 = arith.index_cast %56 : i32 to index
    %58 = vector.load %arg4[%c0_14, %c0_15, %57] : memref<1x4x256xf32, #tpu.memory_space<vmem>>, vector<1x4x128xf32>
    %59 = vector.shape_cast %58 : vector<1x4x128xf32> to vector<4x128xf32>
    %c0_16 = arith.constant 0 : index
    %c0_17 = arith.constant 0 : index
    %60 = arith.index_cast %56 : i32 to index
    %61 = vector.load %arg5[%c0_16, %c0_17, %60] : memref<1x1x256xi32, #tpu.memory_space<vmem>>, vector<1x1x128xi32>
    %62 = vector.shape_cast %61 : vector<1x1x128xi32> to vector<1x128xi32>
    %c0_i32_18 = arith.constant 0 : i32
    %63 = vector.broadcast %c0_i32_18 : i32 to vector<1x128xi32>
    %64 = arith.subi %62, %63 : vector<1x128xi32>
    %c255_i32_19 = arith.constant 255 : i32
    %65 = vector.broadcast %c255_i32_19 : i32 to vector<1x128xi32>
    %66 = arith.cmpi eq, %64, %65 : vector<1x128xi32>
    %c3_i32_20 = arith.constant 3 : i32
    %67 = vector.broadcast %c3_i32_20 : i32 to vector<1x128xi32>
    %68 = arith.select %66, %67, %64 : vector<1x128xi1>, vector<1x128xi32>
    %cst_21 = arith.constant dense<0xFF800000> : vector<128xf32>
    %69 = vector.multi_reduction <maximumf>, %59, %cst_21 [0] : vector<4x128xf32> to vector<128xf32>
    %70 = vector.shape_cast %69 : vector<128xf32> to vector<1x128xf32>
    %71 = vector.broadcast %70 : vector<1x128xf32> to vector<4x128xf32>
    %72 = arith.subf %59, %71 : vector<4x128xf32>
    %73 = math.exp %72 : vector<4x128xf32>
    %cst_22 = arith.constant dense<0.000000e+00> : vector<128xf32>
    %74 = vector.multi_reduction <add>, %73, %cst_22 [0] : vector<4x128xf32> to vector<128xf32>
    %75 = vector.shape_cast %74 : vector<128xf32> to vector<1x128xf32>
    %76 = math.log %75 : vector<1x128xf32>
    %77 = arith.addf %70, %76 : vector<1x128xf32>
    %78 = tpu.iota {dimensions = array<i32: 0>} : vector<4x128xi32>
    %79 = vector.broadcast %68 : vector<1x128xi32> to vector<4x128xi32>
    %80 = arith.cmpi eq, %78, %79 : vector<4x128xi32>
    %cst_23 = arith.constant 0.000000e+00 : f32
    %81 = vector.broadcast %cst_23 : f32 to vector<4x128xf32>
    %82 = arith.select %80, %59, %81 : vector<4x128xi1>, vector<4x128xf32>
    %cst_24 = arith.constant dense<0.000000e+00> : vector<128xf32>
    %83 = vector.multi_reduction <add>, %82, %cst_24 [0] : vector<4x128xf32> to vector<128xf32>
    %84 = vector.shape_cast %83 : vector<128xf32> to vector<1x128xf32>
    %85 = arith.subf %77, %84 : vector<1x128xf32>
    %c-100_i32_25 = arith.constant -100 : i32
    %86 = vector.broadcast %c-100_i32_25 : i32 to vector<1x128xi32>
    %87 = arith.cmpi ne, %68, %86 : vector<1x128xi32>
    %88 = arith.addi %7, %56 : i32
    %89 = tpu.iota {dimensions = array<i32: 1>} : vector<1x128xi32>
    %90 = vector.broadcast %88 : i32 to vector<1x128xi32>
    %91 = arith.addi %90, %89 : vector<1x128xi32>
    %c256_i32_26 = arith.constant 256 : i32
    %92 = vector.broadcast %c256_i32_26 : i32 to vector<1x128xi32>
    %93 = arith.cmpi slt, %91, %92 : vector<1x128xi32>
    %94 = vector.broadcast %8 : i1 to vector<1x128xi1>
    %95 = arith.andi %93, %94 : vector<1x128xi1>
    %96 = arith.andi %87, %95 : vector<1x128xi1>
    %cst_27 = arith.constant 0.000000e+00 : f32
    %97 = vector.broadcast %cst_27 : f32 to vector<1x128xf32>
    %98 = arith.select %96, %85, %97 : vector<1x128xi1>, vector<1x128xf32>
    %99 = arith.addf %54, %98 : vector<1x128xf32>
    %c2_i32_28 = arith.constant 2 : i32
    %c0_29 = arith.constant 0 : index
    %c0_30 = arith.constant 0 : index
    %100 = vector.load %arg7[%c0_29, %c0_30] : memref<1x128xf32, #tpu.memory_space<vmem>>, vector<1x128xf32>
    %101 = arith.addf %100, %99 : vector<1x128xf32>
    %c0_31 = arith.constant 0 : index
    %c0_32 = arith.constant 0 : index
    %102 = vector.load %arg7[%c0_31, %c0_32] : memref<1x128xf32, #tpu.memory_space<vmem>>, vector<1x128xf32>
    tpu.vector_store %arg7[%c0_31, %c0_32], %101 {strides = array<i32>} : memref<1x128xf32, #tpu.memory_space<vmem>>, vector<1x128xf32>,
    %c0_i32_33 = arith.constant 0 : i32
    %103 = arith.cmpi eq, %arg1, %c0_i32_33 : i32
    %104 = arith.extui %103 : i1 to i32
    %c0_i32_34 = arith.constant 0 : i32
    %105 = arith.cmpi ne, %104, %c0_i32_34 : i32
    scf.if %105 {
      %c0_35 = arith.constant 0 : index
      %c0_36 = arith.constant 0 : index
      %106 = vector.load %arg7[%c0_35, %c0_36] : memref<1x128xf32, #tpu.memory_space<vmem>>, vector<1x128xf32>
      %107 = vector.shape_cast %106 : vector<1x128xf32> to vector<1x1x128xf32>
      %cst_37 = arith.constant dense<0.000000e+00> : vector<1xf32>
      %108 = vector.multi_reduction <add>, %107, %cst_37 [1, 2] : vector<1x1x128xf32> to vector<1xf32>
      %109 = vector.shape_cast %108 : vector<1xf32> to vector<1x1x1xf32>
      %110 = vector.extract %109[0, 0, 0] : f32 from vector<1x1x1xf32>
      %111 = vector.broadcast %110 : f32 to vector<1x1x1xf32>
      %c0_38 = arith.constant 0 : index
      %c0_39 = arith.constant 0 : index
      %c0_40 = arith.constant 0 : index
      %112 = vector.load %arg6[%c0_38, %c0_39, %c0_40] : memref<1x1x1xf32, #tpu.memory_space<vmem>>, vector<1x1x1xf32>
      tpu.vector_store %arg6[%c0_38, %c0_39, %c0_40], %111 {strides = array<i32>} : memref<1x1x1xf32, #tpu.memory_space<vmem>>, vector<1x1x1xf32>,
    } else {
    }
    return
  }
  func.func @transform_0(%arg0: i32, %arg1: i32, %arg2: memref<2xi32, #tpu.memory_space<smem>>, %arg3: memref<2xi32, #tpu.memory_space<smem>>) -> (i32, i32, i32) {
    %c1_i32 = arith.constant 1 : i32
    %0 = arith.muli %arg0, %c1_i32 : i32
    %1 = arith.addi %0, %arg1 : i32
    %2 = arith.index_cast %1 : i32 to index
    %3 = memref.load %arg2[%2] : memref<2xi32, #tpu.memory_space<smem>>
    %4 = arith.index_cast %1 : i32 to index
    %5 = memref.load %arg3[%4] : memref<2xi32, #tpu.memory_space<smem>>
    %c0_i32 = arith.constant 0 : i32
    %c0_i32_0 = arith.constant 0 : i32
    return %3, %c0_i32, %5 : i32, i32, i32
  }
  func.func @transform_1(%arg0: i32, %arg1: i32, %arg2: memref<2xi32, #tpu.memory_space<smem>>, %arg3: memref<2xi32, #tpu.memory_space<smem>>) -> (i32, i32, i32) {
    %c1_i32 = arith.constant 1 : i32
    %0 = arith.muli %arg0, %c1_i32 : i32
    %1 = arith.addi %0, %arg1 : i32
    %2 = arith.index_cast %1 : i32 to index
    %3 = memref.load %arg2[%2] : memref<2xi32, #tpu.memory_space<smem>>
    %4 = arith.index_cast %1 : i32 to index
    %5 = memref.load %arg3[%4] : memref<2xi32, #tpu.memory_space<smem>>
    %c0_i32 = arith.constant 0 : i32
    %c0_i32_0 = arith.constant 0 : i32
    return %3, %c0_i32, %5 : i32, i32, i32
  }
  func.func @transform_2(%arg0: i32, %arg1: i32, %arg2: memref<2xi32, #tpu.memory_space<smem>>, %arg3: memref<2xi32, #tpu.memory_space<smem>>) -> (i32, i32, i32) {
    %c0_i32 = arith.constant 0 : i32
    %c0_i32_0 = arith.constant 0 : i32
    %c0_i32_1 = arith.constant 0 : i32
    return %arg0, %c0_i32, %c0_i32_0 : i32, i32, i32
  }
}

</mosaic_0001>

<bundles_post_ra>
// kernel: tpu_custom_call.1
= control target key start
LH: loop header
LB: loop body
LE: loop exit
PB: predicated region body
PF: predicated region fallthrough
CT: control target
= control target key end

     0   :  { %s781_s21 = smov [#allocation4]   ;;  %s782_s22 = smov [#allocation5]   ;;  %s1070_s0 = inlined_call_operand.hbm [shape: s32[2], index: 0, kind: input, shape index: {}]   ;;  %s1071_s2 = inlined_call_operand.hbm [shape: f32[2,4,256], index: 2, kind: input, shape index: {}]   ;;  %s1072_s3 = inlined_call_operand.hbm [shape: s32[2,1,256], index: 3, kind: input, shape index: {}]   ;;  %s1073_s4 = inlined_call_operand.vmem [shape: f32[2,1,1], index: 4, kind: output, shape index: {}]   ;;  %s1074_s1 = inlined_call_operand.hbm [shape: s32[2], index: 1, kind: input, shape index: {}]  }
   0x1   :  { %1079 = sst [smem:[#allocation24_spill]] %s1071_s2  ;;  %s10_s17 = sshll.u32 %s1070_s0, 4  ;;  %s11_s17 = int_to_ptr.hbm [resolvable:$true] %s10_s17 }
   0x2   :  { %1080 = sst [smem:[#allocation25_spill]] %s1073_s4  ;;  %s15_s20 = sshll.u32 %s1074_s1, 4  ;;  %s16_s20 = int_to_ptr.hbm [resolvable:$true] %s15_s20 }
   0x3   :  { %13 = dma.hbm_to_smem %s11_s17, 16, %s781_s21, [#allocation3] }
   0x4   :  { %18 = dma.hbm_to_smem %s16_s20, 16, %s782_s22, [#allocation3] }
   0x5   :  { %735 = dma.done.wait [#allocation3], 32 }
   0x6   :  { %736 = vsyncadd [#allocation3], 4294967264 }
   0x7   :  { %21 = sfence }
   0x8   :  { %22 = vsyncpa [#allocation7], 0 }
   0x9   :  { %24 = vsyncpa [#allocation7 + $0x1], 0 }
   0xa   :  { %25 = vsyncpa [#allocation9], 0 }
   0xb   :  { %27 = vsyncpa [#allocation9 + $0x1], 0  ;;  %s815_s23 = smov 0   ;;  %s817_s0 = smov 0  }
   0xc   :  { %s819_s24 = smov 0   ;;  %s821_s1 = smov 0  }
   0xd   :  { %s823_s25 = smov 0   ;;  %s825_s26 = smov 0  }
   0xe   :  { %s827_s27 = smov 0   ;;  %s829_s28 = smov 0  }
   0xf   :  { %s831_s29 = smov 0  }
  0x10 LB: > { %1081 = sst [smem:[#allocation21_spill]] %s771_s27  ;;  %s45_s30 = sadd.s32 1, %s775_s28  ;;  %s779_s29 = sphi %s831_s29, %s33_s29   ;;  %s775_s28 = sphi %s829_s28, %s1109_s28   ;;  %s771_s27 = sphi %s827_s27, %s1108_s27   ;;  %s767_s26 = sphi %s825_s26, %s1107_s26   ;;  %s763_s25 = sphi %s823_s25, %s1106_s25   ;;  %s759_s1 = sphi %s821_s1, %s1105_s1   ;;  %s755_s24 = sphi %s819_s24, %s1104_s24   ;;  %s751_s0 = sphi %s817_s0, %s1103_s0   ;;  %s747_s23 = sphi %s815_s23, %s1102_s23  }
  0x11   : > { %p47_p0 = scmp.ge.s32.totalorder %s45_s30, 2  ;;  %s50_s5 = sld [smem:[#allocation4 + %s775_s28]] }
  0x12   : > { %s483_s6 = sadd.s32 4294967295, %s779_s29   ;;  %s51_s7 = sld [smem:[#allocation5 + %s775_s28]] }
  0x13   : > { %s1111_s30 = smov (%p47_p0, %s45_s30), 0  ;;  %p67_p1 = scmp.ne.s32.totalorder %s767_s26, %s763_s25 }
  0x14   : > { %p68_p2 = scmp.eq.s32.totalorder %s779_s29, 0  ;;  %s53_s8 = sld [smem:[#allocation4 + %s1111_s30]] }
  0x15   : > { %p73_p3 = scmp.ne.s32.totalorder %s763_s25, %s759_s1  ;;  %s54_s9 = sld [smem:[#allocation5 + %s1111_s30]] }
  0x16   : > { %p872_p4 = por %p68_p2, %p67_p1  ;;  %p876_p5 = scmp.eq.s32.totalorder %s483_s6, 0 }
  0x17   : > { %p1078_p6 = scmp.lt.s32.totalorder %s779_s29, 2  ;;  %s1075_s12 = sand.u32 1, %s767_s26  }
  0x18   : > { %p884_p7 = por %p876_p5, %p73_p3  ;;  %s487_s14 = sshll.u32 %s1075_s12, 3 }
  0x19   : > { %p894_p8 = pnand %p1078_p6, %p872_p4  ;;  %s60_s17 = sadd.s32 1, %s767_s26 }
  0x1a   : > { %s55_s16 = ssub.s32 %s50_s5, %s53_s8  ;;  %p494_p10 = scmp.ge.s32.totalorder %s779_s29, 1 }
  0x1b   : > { %s56_s18 = ssub.s32 %s51_s7, %s54_s9  ;;  %s161_s6 = scalar_lea.vmem [#allocation6], %s487_s14 }
  0x1c   : > { %s57_s19 = sor.u32 %s56_s18, %s55_s16  ;;  %s916_s7 = sshll.u32 %s161_s6, 4 }
  0x1d   : > { %p58_p9 = scmp.eq.s32.totalorder %s57_s19, 0  ;;  %1087 = sst [smem:[#allocation23_spill]] %s916_s7 }
  0x1e   : > { %s504_s20 = scalar_select %p872_p4, [#allocation4], [#allocation10] }
  0x1f   : > { %s902_s21 = scalar_select %p58_p9, %s767_s26, %s60_s17  }
  0x20   : > { %s505_s22 = scalar_select %p872_p4, %s775_s28, 0 }
  0x21   : > { %1086 = sst [smem:[#allocation22_spill]] %s902_s21  ;;  %s1113_s20 = smov (!%p1078_p6, %s504_s20), [#allocation14] }
  0x22   : > { %s1115_s22 = smov (!%p1078_p6, %s505_s22), 0  ;;  %p204_p11 = scmp.lt.s32.totalorder %s779_s29, 3 }
  0x23   : > { %s506_s1 = scalar_select %p872_p4, [#allocation5], [#allocation11] }
  0x24   : > { %s163_s5 = sld [smem:[%s1113_s20 + %s1115_s22]]  ;;  %p919_p12 = pnand %p494_p10, %p204_p11 }
  0x25   : > { %s1117_s1 = smov (!%p1078_p6, %s506_s1), [#allocation15]  ;;  %s925_s16 = sld [smem:[#allocation4 + %s775_s28]] }
  0x26   : > { %s164_s8 = sld [smem:[%s1117_s1 + %s1115_s22]]  ;;  %s94_s22 = sadd.s32 1, %s755_s24 }
  0x27   : > { %s928_s14 = sld [smem:[#allocation5 + %s775_s28]]  ;;  %p107_p13 = scmp.ne.s32.totalorder %s751_s0, %s747_s23 }
  0x28   : > { %s931_s18 = sld [smem:[#allocation4 + %s1111_s30]]  ;;  %p101_p0 = scmp.ne.s32.totalorder %s755_s24, %s751_s0 }
  0x29   : > { %s88_s20 = sld [smem:[#allocation5 + %s1111_s30]]  ;;  %p944_p1 = por %p107_p13, %p876_p5 }
  0x2a   : > { %s489_s10 = sshll.u32 %s163_s5, 1  ;;  %s1089_s2 = sld [smem:[#allocation24_spill]] }
  0x2b   : > { %p643_p4 = pneg %p894_p8 }
  0x2c   : > { %s488_s17 = sshll.u32 %s164_s8, 1  ;;  %s1091_s8 = sand.u32 1, %s767_s26  }
  0x2d   : > { %s169_s19 = sadd.s32 %s489_s10, %s488_s17  ;;  %s158_s4 = scalar_lea.sflag [#allocation7], %s1091_s8 }
  0x2e   : > { %s490_s6 = sshll.u32 %s169_s19, 2 }
  0x30   : > { %s171_s21 = scalar_lea.hbm %s1089_s2, %s490_s6 }
  0x31   : > { %s173_s7 = sshll.u32 %s171_s21, 4  ;;  %s646_s21 = scalar_lea.hbm %s1089_s2, 16  ;;  %s174_s7 = int_to_ptr.hbm [resolvable:$true] %s173_s7 }
  0x32   : > { %s639_s27 = sshra.s32 %s174_s7, 4  ;;  %s640_s27 = int_to_ptr.hbm [resolvable:$true] %s639_s27 }
  0x33   : > { %s641_s10 = scalar_lea.hbm %s640_s27, 8  ;;  %p647_p5 = scmp.lt.s32.totalorder %s640_s27, %s1089_s2 }
  0x34   : > { %p642_p3 = scmp.ne.s32.totalorder %s640_s27, %s641_s10  ;;  %p648_p11 = scmp.lt.s32.totalorder %s646_s21, %s641_s10 }
  0x36   : > { %p644_p9 = pnand %p643_p4, %p642_p3  ;;  %p649_p13 = por %p648_p11, %p647_p5 }
  0x38   : > { %p645_p10 = pneg %p644_p9 }
  0x3a   : > { %p650_p6 = pnand %p649_p13, %p645_p10 }
  0x3c   : > { %653 = shalt.err (!%p650_p6)
}
  0x3d   : > { %s1092_s19 = sld [smem:[#allocation23_spill]]  ;;  %s89_s27 = ssub.s32 %s925_s16, %s931_s18 }
  0x3e   : > { %s90_s1 = ssub.s32 %s928_s14, %s88_s20  ;;  %p103_p6 = por %p101_p0, %p68_p2 }
  0x3f   : > { %s91_s15 = sor.u32 %s90_s1, %s89_s27  ;;  %s182_s8 = sand.u32 1, %s755_s24  }
  0x40   : > { %p92_p3 = scmp.eq.s32.totalorder %s91_s15, 0  ;;  %p1094_p4 = scmp.lt.s32.totalorder %s779_s29, 2 }
  0x41   : > { %s509_s23 = scalar_select %p103_p6, [#allocation4], [#allocation12] }
  0x42   : > { %p973_p9 = pnand %p1094_p4, %p103_p6  ;;  %p1096_p10 = pmov %p1094_p4 }
  0x43   : > { %s1093_s6 = int_to_ptr.vmem [resolvable:$true] %s1092_s19  ;;  %p1098_p5 = pmov %p1094_p4 }
  0x44   : > { %523 = dma.hbm_to_vmem [thread:$0]  (!%p894_p8), %s174_s7, 128, %s1093_s6, %s158_s4  }
  0x45   : > { %s980_s12 = scalar_select %p92_p3, %s755_s24, %s94_s22  }
  0x46   : > { %s510_s21 = scalar_select %p103_p6, %s775_s28, 0 }
  0x47   : > { %s1119_s23 = smov (!%p1096_p10, %s509_s23), [#allocation16]  ;;  %p1097_p8 = pmov %p1094_p4 }
  0x48   : > { %s511_s4 = scalar_select %p103_p6, [#allocation5], [#allocation13] }
  0x49   : > { %s1121_s21 = smov (!%p1097_p8, %s510_s21), 0  ;;  %s491_s16 = sshll.u32 %s182_s8, 1 }
  0x4a   : > { %s188_s7 = sld [smem:[%s1119_s23 + %s1121_s21]]  ;;  %s1123_s4 = smov (!%p1098_p5, %s511_s4), [#allocation17] }
  0x4b   : > { %s189_s14 = sld [smem:[%s1123_s4 + %s1121_s21]]  ;;  %s186_s20 = scalar_lea.vmem [#allocation8], %s491_s16 }
  0x4c   : > { %s199_s17 = sshll.u32 %s186_s20, 4  ;;  %s183_s15 = scalar_lea.sflag [#allocation9], %s182_s8  ;;  %s200_s17 = int_to_ptr.vmem [resolvable:$true] %s199_s17 }
  0x4d   : > { %p673_p0 = pneg %p973_p9 }
  0x50   : > { %s493_s18 = sshll.u32 %s188_s7, 1  ;;  %s676_s7 = scalar_lea.hbm %s1072_s3, 4 }
  0x51   : > { %s492_s11 = sshll.u32 %s189_s14, 1 }
  0x52   : > { %s194_s19 = sadd.s32 %s493_s18, %s492_s11 }
  0x53   : > { %s195_s27 = scalar_lea.hbm %s1072_s3, %s194_s19 }
  0x54   : > { %s197_s1 = sshll.u32 %s195_s27, 4  ;;  %s198_s1 = int_to_ptr.hbm [resolvable:$true] %s197_s1 }
  0x55   : > { %s669_s2 = sshra.s32 %s198_s1, 4  ;;  %s670_s2 = int_to_ptr.hbm [resolvable:$true] %s669_s2 }
  0x56   : > { %s671_s23 = scalar_lea.hbm %s670_s2, 2  ;;  %p677_p6 = scmp.lt.s32.totalorder %s670_s2, %s1072_s3 }
  0x57   : > { %p672_p2 = scmp.ne.s32.totalorder %s670_s2, %s671_s23  ;;  %p678_p3 = scmp.lt.s32.totalorder %s676_s7, %s671_s23 }
  0x59   : > { %p674_p11 = pnand %p673_p0, %p672_p2  ;;  %p679_p4 = por %p678_p3, %p677_p6 }
  0x5b   : > { %p675_p13 = pneg %p674_p11 }
  0x5d   : > { %p680_p10 = pnand %p679_p4, %p675_p13 }
  0x5f   : > { %683 = shalt.err (!%p680_p10)
}
  0x60   : > { %530 = dma.hbm_to_vmem [thread:$0]  (!%p973_p9), %s198_s1, 32, %s200_s17, %s183_s15  }
  0x61   : > { %208 = sbr.rel (%p919_p12) target bundleno = 353 (0x161), region = 28  ;;  %s210_s8 = sand.u32 (!%p919_p12), 1, %s763_s25  }
  0x62   : > { %s495_s18 = sshll.u32 (!%p919_p12), %s210_s8, 3  ;;  %s211_s20 = scalar_lea.sflag (!%p919_p12), [#allocation7], %s210_s8 }
  0x63   : > { %s214_s11 = scalar_lea.vmem (!%p919_p12), [#allocation6], %s495_s18 }
  0x66   : > { %738 = dma.done.wait (%p884_p7), %s211_s20, 128  }
  0x67   : > { %740 = vsyncadd (%p884_p7), %s211_s20, 4294967168  ;;  %s220_s2 = sand.u32 1, %s751_s0  }
  0x68   : > { %s496_s19 = sshll.u32 %s220_s2, 1  ;;  %s221_s10 = scalar_lea.sflag [#allocation9], %s220_s2 }
  0x69   : > { %s224_s17 = scalar_lea.vmem [#allocation8], %s496_s19 }
  0x6a   : > { %742 = dma.done.wait (%p944_p1), %s221_s10, 32  }
  0x6b   : > { %744 = vsyncadd (%p944_p1), %s221_s10, 4294967264  ;;  %v783_v0 = vmov 0.0   ;;  %vm273_vm0 = vcmask 1043456   ;;  %v269_v1 = vld [vmem:[%s214_s11] sm:$0xf]  ;;  %v294_v14 = vlaneseq  ;;  %s1099_s13 = sld [smem:[#allocation21_spill]] }
  0x6c   : > { %264 = vst [vmem:[#allocation2] sm:$0x1] %v783_v0  ;;  %v274_v2 = vsel %vm273_vm0, %v269_v1, -inf  ;;  %v498_v3 = vld [vmem:[%s214_s11 + $0x4] sm:$0xf]  ;;  %vm374_vm14 = vcmask 1040384  }
  0x6d   : > { %v275_v4 = vrot.slane %v274_v2, 4  ;;  %v327_v5 = vsel %vm273_vm0, %v498_v3, -inf  ;;  %v270_v6 = vld [vmem:[%s224_s17] sm:$0x1]  ;;  %v499_v9 = vld [vmem:[%s224_s17 + $0x1] sm:$0x1] }
  0x6e   : > { %v328_v7 = vrot.slane %v327_v5, 4  ;;  %vm271_vm1 = vcmp.eq.s32.totalorder %v270_v6, 255  ;;  %vm325_vm2 = vcmp.eq.s32.totalorder %v499_v9, 255  ;;  %v295_v21 = vshrl.u32 %v294_v14, 7  ;;  %s1100_s15 = sld [smem:[#allocation25_spill]] }
  0x6f   : > { %v276_v8 = vmax.f32 %v274_v2, %v275_v4  ;;  %v1016_v15 = vsel %vm271_vm1, 3, %v270_v6  ;;  %v1018_v18 = vsel %vm325_vm2, 3, %v499_v9  ;;  %v310_v51 = vand.u32 127, %v294_v14 }
  0x70   : > { %v329_v10 = vmax.f32 %v327_v5, %v328_v7  ;;  %v296_v22 = vperm.slane %v1016_v15, 0  ;;  %v347_v24 = vperm.slane %v1018_v18, 0  ;;  %vm307_vm8 = vcmp.ne.s32.totalorder %v1016_v15, 4294967196 }
  0x71   : > { %v277_v11 = vrot.slane %v276_v8, 2  ;;  %s266_s9 = sld [smem:[#allocation5 + %s1099_s13]]  ;;  %p268_p7 = scmp.lt.s32.totalorder %s1099_s13, 2  ;;  %vm358_vm10 = vcmp.ne.s32.totalorder %v1018_v18, 4294967196  ;;  %vm386_vm15 = vcmask 0  }
  0x72   : > { %v330_v12 = vrot.slane %v329_v10, 2  ;;  %vm297_vm3 = vcmp.eq.s32.totalorder %v295_v21, %v296_v22  ;;  %vm348_vm4 = vcmp.eq.s32.totalorder %v295_v21, %v347_v24  ;;  %p257_p12 = scmp.lt.s32.totalorder %s1099_s13, 1 }
  0x73   : > { %v278_v13 = vmax.f32 %v276_v8, %v277_v11  ;;  %v298_v29 = vsel %vm297_vm3, %v269_v1, 0.0  ;;  %v349_v30 = vsel %vm348_vm4, %v498_v3, 0.0  ;;  %s314_s6 = scalar_select %p268_p7, 1, 0 }
  0x74   : > { %v331_v16 = vmax.f32 %v329_v10, %v330_v12  ;;  %v299_v31 = vsel %vm273_vm0, %v298_v29, 0.0  ;;  %v350_v32 = vsel %vm273_vm0, %v349_v30, 0.0  ;;  %s1125_s13 = smov (!%p257_p12, %s1099_s13), 1 }
  0x75   : > { %v279_v17 = vrot.slane %v278_v13, 1  ;;  %v300_v36 = vrot.slane %v299_v31, 4  ;;  %v351_v39 = vrot.slane %v350_v32, 4  ;;  %v315_v61 = vstv %s314_s6  ;;  %s259_s23 = scalar_lea.vmem %s1100_s15, %s1125_s13 }
  0x76   : > { %v332_v19 = vrot.slane %v331_v16, 1  ;;  %vm316_vm6 = vcmp.eq.s32.totalorder %v315_v61, 1 }
  0x77   : > { %v1020_v20 = vmax.f32 %v278_v13, %v279_v17  ;;  %v301_v42 = vadd.f32 %v300_v36, %v299_v31  ;;  %s497_s5 = sshll.u32 %s266_s9, 8  ;;  %v352_v45 = vadd.f32 %v351_v39, %v350_v32  ;;  %v367_v13 = vld [vmem:[#allocation2] sm:$0x1] }
  0x78   : > { %v1023_v23 = vmax.f32 %v331_v16, %v332_v19  ;;  %s359_s22 = sadd.s32 128, %s497_s5  ;;  %v311_v53 = vstv %s497_s5 }
  0x79   : > { %v281_v25 = vsub.f32 %v269_v1, %v1020_v20  ;;  %v302_v48 = vrot.slane %v301_v42, 2  ;;  %v353_v52 = vrot.slane %v352_v45, 2  ;;  %v360_v56 = vstv %s359_s22 }
  0x7a   : > { %v334_v26 = vsub.f32 %v498_v3, %v1023_v23  ;;  %v312_v59 = vadd.s32 %v311_v53, %v310_v51  ;;  %v361_v62 = vadd.s32 %v360_v56, %v310_v51 }
  0x7b   : > { %v282_v27 = vmul.f32 1.442695, %v281_v25  ;;  %v303_v57 = vadd.f32 %v302_v48, %v301_v42  ;;  %v354_v60 = vadd.f32 %v353_v52, %v352_v45 }
  0x7c   : > { %v335_v28 = vmul.f32 1.442695, %v334_v26  ;;  %vm313_vm5 = vcmp.lt.s32.totalorder %v312_v59, 256  ;;  %vm362_vm7 = vcmp.lt.s32.totalorder %v361_v62, 256 }
  0x7d   : > { %607 = vpow2.f32 %v282_v27  ;;  %v304_v63 = vrot.slane %v303_v57, 1  ;;  %v355_v0 = vrot.slane %v354_v60, 1  ;;  %vm317_vm9 = vmand %vm313_vm5, %vm316_vm6 }
  0x7e   : > { %609 = vpow2.f32 %v335_v28  ;;  %vm363_vm11 = vmand %vm362_vm7, %vm316_vm6 }
  0x7f   : > { %v305_v4 = vadd.f32 %v304_v63, %v303_v57  ;;  %v356_v6 = vadd.f32 %v355_v0, %v354_v60  ;;  %vm318_vm12 = vmand %vm307_vm8, %vm317_vm9 }
  0x80   : > { %vm364_vm13 = vmand %vm358_vm10, %vm363_vm11 }
  0x83   : > { %v608_v33 = vpop.eup %607 }
  0x84   : > { %v610_v34 = vpop.eup %609  ;;  %v284_v35 = vsel %vm273_vm0, %v608_v33, 0.0 }
  0x85   : > { %v285_v37 = vrot.slane %v284_v35, 4  ;;  %v337_v38 = vsel %vm273_vm0, %v610_v34, 0.0 }
  0x86   : > { %v338_v40 = vrot.slane %v337_v38, 4 }
  0x87   : > { %v286_v41 = vadd.f32 %v285_v37, %v284_v35 }
  0x88   : > { %v339_v43 = vadd.f32 %v338_v40, %v337_v38 }
  0x89   : > { %v287_v44 = vrot.slane %v286_v41, 2 }
  0x8a   : > { %v340_v46 = vrot.slane %v339_v43, 2 }
  0x8b   : > { %v288_v47 = vadd.f32 %v287_v44, %v286_v41 }
  0x8c   : > { %v341_v49 = vadd.f32 %v340_v46, %v339_v43 }
  0x8d   : > { %v289_v50 = vrot.slane %v288_v47, 1 }
  0x8e   : > { %v342_v54 = vrot.slane %v341_v49, 1 }
  0x8f   : > { %v290_v55 = vadd.f32 %v289_v50, %v288_v47 }
  0x90   : > { %v343_v58 = vadd.f32 %v342_v54, %v341_v49 }
  0x91   : > { %611 = vlog2.f32 %v290_v55 }
  0x92   : > { %613 = vlog2.f32 %v343_v58 }
  0x97   : > { %v612_v1 = vpop.eup %611 }
  0x98   : > { %v614_v2 = vpop.eup %613  ;;  %v292_v3 = vmul.f32 0.6931472, %v612_v1 }
  0x99   : > { %v345_v5 = vmul.f32 0.6931472, %v614_v2 }
  0x9a   : > { %v293_v7 = vadd.f32 %v292_v3, %v1020_v20 }
  0x9b   : > { %v346_v8 = vadd.f32 %v345_v5, %v1023_v23 }
  0x9c   : > { %v306_v9 = vsub.f32 %v293_v7, %v305_v4 }
  0x9d   : > { %v357_v10 = vsub.f32 %v346_v8, %v356_v6 }
  0x9e   : > { %v319_v11 = vsel %vm318_vm12, %v306_v9, 0.0 }
  0x9f   : > { %v365_v12 = vsel %vm364_vm13, %v357_v10, 0.0 }
  0xa0   : > { %v366_v14 = vadd.f32 %v365_v12, %v319_v11 }
  0xa2   : > { %v368_v15 = vadd.f32 %v367_v13, %v366_v14 }
  0xa4   : > { %369 = vst [vmem:[#allocation2] sm:$0x1] %v368_v15 }
  0xab   : > { %v373_v16 = vld [vmem:[#allocation2] sm:$0x1] }
  0xac   : > { %v375_v17 = vsel %vm374_vm14, %v373_v16, 0.0 }
  0xad   : > { %376 = vadd.xlane.f32.xlu0 %v375_v17 }
 0x120   : > { %v377_v18 = vpop.xlane.xlu0 %376 }
 0x121   : > { %v378_v19 = vrot.slane %v377_v18, 4 }
 0x123   : > { %v379_v20 = vadd.f32 %v378_v19, %v377_v18 }
 0x125   : > { %v380_v21 = vrot.slane %v379_v20, 2 }
 0x127   : > { %v381_v22 = vadd.f32 %v380_v21, %v379_v20 }
 0x129   : > { %v382_v23 = vrot.slane %v381_v22, 1 }
 0x12b   : > { %v383_v24 = vadd.f32 %v382_v23, %v381_v22 }
 0x12d   : > { %502 = vpush %v383_v24 }
 0x15e   : > { %s503_s21 = spop %502 }
 0x15f   : > { %v385_v25 = vstv %s503_s21 }
 0x160   : > { %387 = vst.msk [vmem:[%s259_s23] sm:$0x1] %vm386_vm15, %v385_v25 }
 0x161 PF: > { %s33_s29 = sadd.s32 1, %s779_s29   ;;  %s1101_s4 = sld [smem:[#allocation22_spill]] }
 0x162   : > { %p30_p1 = scmp.ge.s32.totalorder %s33_s29, 4   ;;  %s1102_s23 = smov %s751_s0 }
 0x163   : > { %s1103_s0 = smov %s755_s24  ;;  %s1104_s24 = smov %s980_s12 }
 0x164   : > { %s1105_s1 = smov %s763_s25  ;;  %s1106_s25 = smov %s767_s26 }
 0x165   : > { %s1108_s27 = smov %s775_s28  ;;  %s1109_s28 = smov %s1111_s30 }
 0x166   :  { %32 = sbr.rel (!%p30_p1) target bundleno = 16 (0x10), region = 91 }
 0x167   : > { %s1107_s26 = smov %s1101_s4 }
 0x16b   :  { %405 = vsyncpa [#allocation7], 1 }
 0x16c   :  { %407 = vsyncpa [#allocation7 + $0x1], 1 }
 0x16d   :  { %408 = vsyncpa [#allocation9], 1 }
 0x16e   :  { %410 = vsyncpa [#allocation9 + $0x1], 1 }

</bundles_post_ra>
